<compile_context>
chip_gen: v7x
topology: tpu7x:2x2x1
jax: 0.10.0
libtpu: 0.0.40
codegen_flags: <defaults>
</compile_context>

<pallas_src>
import functools
import math

import jax
import jax.numpy as jnp
from jax import lax
from jax.experimental import pallas as pl
from jax.experimental.pallas import tpu as pltpu


# ---------------------------------------------------------------------------
# Helpers
# ---------------------------------------------------------------------------
def _round_up(n, m):
    return ((n + m - 1) // m) * m


def _cdiv(a, b):
    return -(-a // b)


def _gelu_tanh(x):
    # tanh-approx GELU; tanh executes in the EUP slot (co-issues with MXU / VALU).
    c = math.sqrt(2.0 / math.pi)
    return 0.5 * x * (1.0 + jnp.tanh(c * (x + 0.044715 * (x * x * x))))


def _layernorm(x, gamma, beta, eps=1e-5):
    mu = jnp.mean(x, axis=-1, keepdims=True)
    xc = x - mu
    var = jnp.mean(xc * xc, axis=-1, keepdims=True)   # biased variance (PyTorch LayerNorm)
    return xc * lax.rsqrt(var + eps) * gamma + beta


def _tpu_caps():
    """Returns (vmem_capacity_bytes, bf16_vpu) with conservative fallbacks."""
    vmem = 128 << 20
    try:
        info = pltpu.get_tpu_info()
        cap = getattr(info, "vmem_capacity_bytes", None)
        if cap:
            vmem = int(cap)
    except Exception:
        pass
    kind = ""
    try:
        kind = jax.devices()[0].device_kind.lower()
    except Exception:
        pass
    older = any(t in kind for t in ("v2", "v3", "v4", "v5"))
    if "v7" in kind:
        vmem = min(vmem, 64 << 20)   # per-TC VMEM on v7x
    return vmem, (not older)


# ---------------------------------------------------------------------------
# Pallas kernel: one token-tile of the FourierBlock forward
# ---------------------------------------------------------------------------
def fourier_block_kernel(x_ref, c_ref, g_ref, bln_ref,
                         w1_ref, b1_ref, w2_ref, b2_ref, o_ref,
                         *, n_sub, act_dtype):
    rows = x_ref.shape[0] // n_sub
    g = g_ref[...]
    bln = bln_ref[...]
    b1 = b1_ref[...]
    b2 = b2_ref[...]

    # Static (unrolled) sub-tile loop: interleaved sub-tiles let the scheduler overlap
    # MXU passes of sub-tile i+1 with the LN / GELU (XLU / VALU / EUP) work of sub-tile i.
    for i in range(n_sub):
        sl = pl.ds(i * rows, rows)
        xb = x_ref[sl, :].astype(jnp.bfloat16)           # xf = x.float(); bf16 for the MXU
        # Re(torch.fft.fft(xf, dim=-1)) == xf @ C (real input); bf16 operands, f32 acc.
        fx = jnp.dot(xb, c_ref[...], preferred_element_type=jnp.float32)

        # LayerNorm #1: affine (gamma/beta) is folded into (W1', b1'), so only
        # center + rsqrt-scale is needed here (f32 reductions).
        mu = jnp.mean(fx, axis=-1, keepdims=True)
        xc = fx - mu
        var = jnp.mean(xc * xc, axis=-1, keepdims=True)
        xhat = xc * lax.rsqrt(var + 1e-5)

        # ff: Linear -> GELU -> Linear (Dropout = identity in eval); f32 accumulation.
        h = jnp.dot(xhat.astype(jnp.bfloat16), w1_ref[...],
                    preferred_element_type=jnp.float32) + b1
        h = _gelu_tanh(h.astype(act_dtype))               # bf16 on v6e/v7x, f32 on v5e
        h = jnp.dot(h.astype(jnp.bfloat16), w2_ref[...],
                    preferred_element_type=jnp.float32) + b2

        # LayerNorm #2 (same parameters) -> block output.
        o_ref[sl, :] = _layernorm(h, g, bln).astype(o_ref.dtype)


# ---------------------------------------------------------------------------
# Wrapper
# ---------------------------------------------------------------------------
def fourier_block(x, params, *, tm=None, weight_dtype=jnp.bfloat16, out_dtype=jnp.float32):
    """x: (B, T, D) array -> (B, T, D) out_dtype (f32 default, matching x.float())."""
    B, T, D = x.shape
    M = B * T
    x2 = x.reshape(M, D)

    vmem_cap, bf16_vpu = _tpu_caps()
    act_dtype = jnp.bfloat16 if bf16_vpu else jnp.float32
    if tm is None:
        tm = 512 if vmem_cap > (96 << 20) else 256        # bigger tiles on v5e/v6e

    # >= 2 grid programs whenever possible (v7x has 2 TCs sharing the "parallel" axis).
    num_tiles = _cdiv(M, tm)
    if num_tiles < 2 and M >= 16:
        num_tiles = 2
    base = _cdiv(M, num_tiles)
    align = 128 if base >= 128 else 8                     # MXU-pass / sublane alignment
    tm_eff = _round_up(base, align)
    Mp = tm_eff * num_tiles
    if Mp != M:
        x2 = jnp.pad(x2, ((0, Mp - M), (0, 0)))

    # In-body sub-tiles (static unroll) for MXU / LN-GELU overlap.
    n_sub = 1
    for cand in (4, 2):
        if tm_eff % cand == 0 and tm_eff // cand >= 128:
            n_sub = cand
            break

    g = params["ln_g"].astype(jnp.float32)       # (1, D)
    beta = params["ln_b"].astype(jnp.float32)    # (1, D)
    w1 = params["w1"].astype(jnp.float32)        # (D, D), (in, out) layout
    b1 = params["b1"].astype(jnp.float32)        # (1, D)
    # Fold LN1 affine into Linear1: (xhat*g + beta)@W1 + b1 == xhat@(diag(g)W1) + (beta@W1 + b1)
    w1f = (g.reshape(D, 1) * w1).astype(weight_dtype)
    b1f = (beta @ w1 + b1).astype(jnp.float32)
    w2f = params["w2"].astype(weight_dtype)
    b2f = params["b2"].astype(jnp.float32)
    # DFT cosine matrix fed to the MXU in bf16 (f32 accumulation).
    # TODO(synk): use a bf16x2 hi/lo split of C if tighter Re(FFT) fidelity is ever required.
    cmat = params["dft_cos"].astype(weight_dtype)

    in_item = jnp.dtype(x2.dtype).itemsize
    w_item = jnp.dtype(weight_dtype).itemsize
    Dp = _round_up(D, 128)

    def vmem_estimate(weight_bufs):
        act = 2 * tm_eff * Dp * in_item + 2 * tm_eff * Dp * 4   # in/out tiles, double-buffered
        weights = weight_bufs * 3 * Dp * Dp * w_item            # C, W1', W2 (resident)
        biases = 2 * 4 * 8 * Dp * 4                             # 4 bias rows, padded, 2-deep
        temps = 6 * (tm_eff // n_sub) * Dp * 4                  # live f32 intermediates
        return act + weights + biases + temps + (6 << 20)

    cost = pl.CostEstimate(
        flops=6 * Mp * D * D + 40 * Mp * D,                     # 3 DxD matmuls + elementwise
        transcendentals=Mp * D,                                  # tanh in GELU
        bytes_accessed=Mp * D * (in_item + 4) + 3 * D * D * w_item + 4 * D * 4,
    )

    row = lambda i: (i, 0)
    const = lambda i: (0, 0)

    def build(single_buffer_weights):
        if single_buffer_weights:
            # Constant index_map -> data is only DMA'd once; Buffered(1) halves weight VMEM.
            w_spec = pl.BlockSpec((D, D), const, pipeline_mode=pl.Buffered(1))
        else:
            w_spec = pl.BlockSpec((D, D), const)
        b_spec = pl.BlockSpec((1, D), const)                     # tiny; default buffering
        vmem_limit = int(min(
            max(vmem_estimate(1 if single_buffer_weights else 2), 32 << 20),
            (48 << 20) if vmem_cap <= (72 << 20) else (100 << 20),  # headroom on v7x
            max(vmem_cap - (8 << 20), 32 << 20),
        ))
        kern = functools.partial(fourier_block_kernel, n_sub=n_sub, act_dtype=act_dtype)
        return pl.pallas_call(
            kern,
            out_shape=jax.ShapeDtypeStruct((Mp, D), out_dtype),
            grid_spec=pltpu.PrefetchScalarGridSpec(
                num_scalar_prefetch=0,
                grid=(num_tiles,),
                in_specs=[
                    pl.BlockSpec((tm_eff, D), row),   # x tile
                    w_spec,                            # DFT cosine matrix (bf16)
                    b_spec, b_spec,                    # final-LN gamma, beta
                    w_spec, b_spec,                    # W1' (LN1 affine folded), b1'
                    w_spec, b_spec,                    # W2, b2
                ],
                out_specs=pl.BlockSpec((tm_eff, D), row),
            ),
            compiler_params=pltpu.CompilerParams(
                dimension_semantics=("parallel",),
                vmem_limit_bytes=vmem_limit,
            ),
            cost_estimate=cost,
        )

    args = (x2, cmat, g, beta, w1f, b1f, w2f, b2f)
    try:
        out = build(True)(*args)
    except Exception:
        # Fallback if pipeline_mode=pl.Buffered(1) is rejected by this jax/Mosaic version.
        out = build(False)(*args)

    return out[:M].reshape(B, T, D)


# ---------------------------------------------------------------------------
# Deterministic parameter init (config.n_embd = D, config.bias = True, eval-mode dropout)
# ---------------------------------------------------------------------------
def init_params(key, n_embd):
    D = n_embd
    kw = jax.random.split(key, 4)
    scale = 1.0 / math.sqrt(D)
    # Linear weights stored pre-transposed as (in, out): x @ W == x @ weight.T in PyTorch.
    params = {
        "w1": jax.random.normal(kw[0], (D, D), jnp.float32) * scale,
        "b1": jax.random.normal(kw[1], (1, D), jnp.float32) * scale,
        "w2": jax.random.normal(kw[2], (D, D), jnp.float32) * scale,
        "b2": jax.random.normal(kw[3], (1, D), jnp.float32) * scale,
        "ln_g": jnp.ones((1, D), jnp.float32),    # nn.LayerNorm default init
        "ln_b": jnp.zeros((1, D), jnp.float32),
    }
    n = jnp.arange(D, dtype=jnp.float32)
    params["dft_cos"] = jnp.cos(2.0 * jnp.pi * jnp.outer(n, n) / D).astype(jnp.float32)
    return params


# ---------------------------------------------------------------------------
# Pure-JAX reference (real FFT, all-f32, exact erf GELU) mirroring the PyTorch forward
# ---------------------------------------------------------------------------
def fourier_block_ref(x, params):
    xf = x.astype(jnp.float32)
    fx = jnp.real(jnp.fft.fft(xf, axis=-1)).astype(jnp.float32)
    g, b = params["ln_g"][0], params["ln_b"][0]
    h = _layernorm(fx, g, b)
    h = h @ params["w1"] + params["b1"][0]
    h = 0.5 * h * (1.0 + jax.scipy.special.erf(h / math.sqrt(2.0)))   # exact GELU (torch default)
    h = h @ params["w2"] + params["b2"][0]          # Dropout = identity (eval)
    return _layernorm(h, g, b)


if __name__ == "__main__":
    B, T, D = 2, 8, 32          # batch, seq, n_embd (small demo shapes)
    key = jax.random.PRNGKey(0)
    kx, kp = jax.random.split(key)
    x = jax.random.normal(kx, (B, T, D), jnp.float32)
    params = init_params(kp, D)

    y = fourier_block(x, params)
    y = jax.block_until_ready(y)

    y_ref = fourier_block_ref(x, params)
    assert y.shape == (B, T, D) and y.dtype == jnp.float32
    # bf16 matmul inputs (f32 accumulation) + tanh-GELU vs. the all-f32 exact reference:
    # use a normalized max-error check instead of tight per-element allclose.
    rel_err = float(jnp.max(jnp.abs(y - y_ref)) / jnp.max(jnp.abs(y_ref)))
    assert rel_err < 5e-2, f"normalized max error {rel_err}"
    print("KERNEL_OK")
</pallas_src>

<mosaic_0001>
module attributes {stable_mosaic.version = 11 : i64} {
  func.func @fourier_block_kernel(%arg0: i32, %arg1: memref<8x32xf32, #tpu.memory_space<vmem>>, %arg2: memref<32x32xbf16, #tpu.memory_space<vmem>>, %arg3: memref<1x32xf32, #tpu.memory_space<vmem>>, %arg4: memref<1x32xf32, #tpu.memory_space<vmem>>, %arg5: memref<32x32xbf16, #tpu.memory_space<vmem>>, %arg6: memref<1x32xf32, #tpu.memory_space<vmem>>, %arg7: memref<32x32xbf16, #tpu.memory_space<vmem>>, %arg8: memref<1x32xf32, #tpu.memory_space<vmem>>, %arg9: memref<8x32xf32, #tpu.memory_space<vmem>>) attributes {dimension_semantics = [#tpu.dimension_semantics<parallel>], iteration_bounds = array<i64: 2>, scalar_prefetch = 0 : i64, scratch_operands = 0 : i64, tpu.core_type = #tpu.core_type<tc>, window_params = [{transform_indices = @transform_0, window_bounds = array<i64: 8, 32>}, {pipeline_mode = #tpu.pipeline_mode<synchronous>, transform_indices = @transform_1, window_bounds = array<i64: 32, 32>}, {pipeline_mode = #tpu.pipeline_mode<synchronous>, transform_indices = @transform_2, window_bounds = array<i64: 1, 32>}, {pipeline_mode = #tpu.pipeline_mode<synchronous>, transform_indices = @transform_3, window_bounds = array<i64: 1, 32>}, {pipeline_mode = #tpu.pipeline_mode<synchronous>, transform_indices = @transform_4, window_bounds = array<i64: 32, 32>}, {pipeline_mode = #tpu.pipeline_mode<synchronous>, transform_indices = @transform_5, window_bounds = array<i64: 1, 32>}, {pipeline_mode = #tpu.pipeline_mode<synchronous>, transform_indices = @transform_6, window_bounds = array<i64: 32, 32>}, {pipeline_mode = #tpu.pipeline_mode<synchronous>, transform_indices = @transform_7, window_bounds = array<i64: 1, 32>}, {transform_indices = @transform_8, window_bounds = array<i64: 8, 32>}]} {
    %c0 = arith.constant 0 : index
    %c0_0 = arith.constant 0 : index
    %0 = vector.load %arg3[%c0, %c0_0] : memref<1x32xf32, #tpu.memory_space<vmem>>, vector<1x32xf32>
    %c0_1 = arith.constant 0 : index
    %c0_2 = arith.constant 0 : index
    %1 = vector.load %arg4[%c0_1, %c0_2] : memref<1x32xf32, #tpu.memory_space<vmem>>, vector<1x32xf32>
    %c0_3 = arith.constant 0 : index
    %c0_4 = arith.constant 0 : index
    %2 = vector.load %arg6[%c0_3, %c0_4] : memref<1x32xf32, #tpu.memory_space<vmem>>, vector<1x32xf32>
    %c0_5 = arith.constant 0 : index
    %c0_6 = arith.constant 0 : index
    %3 = vector.load %arg8[%c0_5, %c0_6] : memref<1x32xf32, #tpu.memory_space<vmem>>, vector<1x32xf32>
    %c0_7 = arith.constant 0 : index
    %c0_8 = arith.constant 0 : index
    %4 = vector.load %arg1[%c0_7, %c0_8] : memref<8x32xf32, #tpu.memory_space<vmem>>, vector<8x32xf32>
    %5 = arith.truncf %4 : vector<8x32xf32> to vector<8x32xbf16>
    %c0_9 = arith.constant 0 : index
    %c0_10 = arith.constant 0 : index
    %6 = vector.load %arg2[%c0_9, %c0_10] : memref<32x32xbf16, #tpu.memory_space<vmem>>, vector<32x32xbf16>
    %cst = arith.constant dense<0.000000e+00> : vector<8x32xf32>
    %7 = tpu.matmul %5, %6, %cst {dimension_numbers = #tpu.dot_dimension_numbers<[1], [0], [0], [1], [0, 0, 1, 1], [], []>} : vector<8x32xbf16>, vector<32x32xbf16>, vector<8x32xf32> -> vector<8x32xf32>
    %cst_11 = arith.constant dense<0.000000e+00> : vector<8xf32>
    %8 = vector.multi_reduction <add>, %7, %cst_11 [1] : vector<8x32xf32> to vector<8xf32>
    %9 = vector.shape_cast %8 : vector<8xf32> to vector<8x1xf32>
    %cst_12 = arith.constant 3.200000e+01 : f32
    %10 = vector.broadcast %cst_12 : f32 to vector<8x1xf32>
    %11 = arith.divf %9, %10 : vector<8x1xf32>
    %12 = vector.broadcast %11 : vector<8x1xf32> to vector<8x32xf32>
    %13 = arith.subf %7, %12 : vector<8x32xf32>
    %14 = arith.mulf %13, %13 : vector<8x32xf32>
    %cst_13 = arith.constant dense<0.000000e+00> : vector<8xf32>
    %15 = vector.multi_reduction <add>, %14, %cst_13 [1] : vector<8x32xf32> to vector<8xf32>
    %16 = vector.shape_cast %15 : vector<8xf32> to vector<8x1xf32>
    %cst_14 = arith.constant 3.200000e+01 : f32
    %17 = vector.broadcast %cst_14 : f32 to vector<8x1xf32>
    %18 = arith.divf %16, %17 : vector<8x1xf32>
    %cst_15 = arith.constant 9.99999974E-6 : f32
    %19 = vector.broadcast %cst_15 : f32 to vector<8x1xf32>
    %20 = arith.addf %18, %19 : vector<8x1xf32>
    %21 = math.rsqrt %20 : vector<8x1xf32>
    %22 = vector.broadcast %21 : vector<8x1xf32> to vector<8x32xf32>
    %23 = arith.mulf %13, %22 : vector<8x32xf32>
    %24 = arith.truncf %23 : vector<8x32xf32> to vector<8x32xbf16>
    %c0_16 = arith.constant 0 : index
    %c0_17 = arith.constant 0 : index
    %25 = vector.load %arg5[%c0_16, %c0_17] : memref<32x32xbf16, #tpu.memory_space<vmem>>, vector<32x32xbf16>
    %cst_18 = arith.constant dense<0.000000e+00> : vector<8x32xf32>
    %26 = tpu.matmul %24, %25, %cst_18 {dimension_numbers = #tpu.dot_dimension_numbers<[1], [0], [0], [1], [0, 0, 1, 1], [], []>} : vector<8x32xbf16>, vector<32x32xbf16>, vector<8x32xf32> -> vector<8x32xf32>
    %27 = vector.broadcast %2 : vector<1x32xf32> to vector<8x32xf32>
    %28 = arith.addf %26, %27 : vector<8x32xf32>
    %29 = arith.truncf %28 : vector<8x32xf32> to vector<8x32xbf16>
    %cst_19 = arith.constant 5.000000e-01 : bf16
    %30 = vector.broadcast %cst_19 : bf16 to vector<8x32xbf16>
    %31 = arith.mulf %30, %29 : vector<8x32xbf16>
    %32 = arith.mulf %29, %29 : vector<8x32xbf16>
    %33 = arith.mulf %32, %29 : vector<8x32xbf16>
    %cst_20 = arith.constant 4.467770e-02 : bf16
    %34 = vector.broadcast %cst_20 : bf16 to vector<8x32xbf16>
    %35 = arith.mulf %34, %33 : vector<8x32xbf16>
    %36 = arith.addf %29, %35 : vector<8x32xbf16>
    %cst_21 = arith.constant 7.968750e-01 : bf16
    %37 = vector.broadcast %cst_21 : bf16 to vector<8x32xbf16>
    %38 = arith.mulf %37, %36 : vector<8x32xbf16>
    %39 = math.tanh %38 : vector<8x32xbf16>
    %cst_22 = arith.constant 1.000000e+00 : bf16
    %40 = vector.broadcast %cst_22 : bf16 to vector<8x32xbf16>
    %41 = arith.addf %40, %39 : vector<8x32xbf16>
    %42 = arith.mulf %31, %41 : vector<8x32xbf16>
    %c0_23 = arith.constant 0 : index
    %c0_24 = arith.constant 0 : index
    %43 = vector.load %arg7[%c0_23, %c0_24] : memref<32x32xbf16, #tpu.memory_space<vmem>>, vector<32x32xbf16>
    %cst_25 = arith.constant dense<0.000000e+00> : vector<8x32xf32>
    %44 = tpu.matmul %42, %43, %cst_25 {dimension_numbers = #tpu.dot_dimension_numbers<[1], [0], [0], [1], [0, 0, 1, 1], [], []>} : vector<8x32xbf16>, vector<32x32xbf16>, vector<8x32xf32> -> vector<8x32xf32>
    %45 = vector.broadcast %3 : vector<1x32xf32> to vector<8x32xf32>
    %46 = arith.addf %44, %45 : vector<8x32xf32>
    %cst_26 = arith.constant dense<0.000000e+00> : vector<8xf32>
    %47 = vector.multi_reduction <add>, %46, %cst_26 [1] : vector<8x32xf32> to vector<8xf32>
    %48 = vector.shape_cast %47 : vector<8xf32> to vector<8x1xf32>
    %cst_27 = arith.constant 3.200000e+01 : f32
    %49 = vector.broadcast %cst_27 : f32 to vector<8x1xf32>
    %50 = arith.divf %48, %49 : vector<8x1xf32>
    %51 = vector.broadcast %50 : vector<8x1xf32> to vector<8x32xf32>
    %52 = arith.subf %46, %51 : vector<8x32xf32>
    %53 = arith.mulf %52, %52 : vector<8x32xf32>
    %cst_28 = arith.constant dense<0.000000e+00> : vector<8xf32>
    %54 = vector.multi_reduction <add>, %53, %cst_28 [1] : vector<8x32xf32> to vector<8xf32>
    %55 = vector.shape_cast %54 : vector<8xf32> to vector<8x1xf32>
    %cst_29 = arith.constant 3.200000e+01 : f32
    %56 = vector.broadcast %cst_29 : f32 to vector<8x1xf32>
    %57 = arith.divf %55, %56 : vector<8x1xf32>
    %cst_30 = arith.constant 9.99999974E-6 : f32
    %58 = vector.broadcast %cst_30 : f32 to vector<8x1xf32>
    %59 = arith.addf %57, %58 : vector<8x1xf32>
    %60 = math.rsqrt %59 : vector<8x1xf32>
    %61 = vector.broadcast %60 : vector<8x1xf32> to vector<8x32xf32>
    %62 = arith.mulf %52, %61 : vector<8x32xf32>
    %63 = vector.broadcast %0 : vector<1x32xf32> to vector<8x32xf32>
    %64 = arith.mulf %62, %63 : vector<8x32xf32>
    %65 = vector.broadcast %1 : vector<1x32xf32> to vector<8x32xf32>
    %66 = arith.addf %64, %65 : vector<8x32xf32>
    %c0_31 = arith.constant 0 : index
    %c0_32 = arith.constant 0 : index
    %67 = vector.load %arg9[%c0_31, %c0_32] : memref<8x32xf32, #tpu.memory_space<vmem>>, vector<8x32xf32>
    tpu.vector_store %arg9[%c0_31, %c0_32], %66 {strides = array<i32>} : memref<8x32xf32, #tpu.memory_space<vmem>>, vector<8x32xf32>,
    return
  }
  func.func @transform_0(%arg0: i32) -> (i32, i32) {
    %c0_i32 = arith.constant 0 : i32
    %c0_i32_0 = arith.constant 0 : i32
    return %arg0, %c0_i32 : i32, i32
  }
  func.func @transform_1(%arg0: i32) -> (i32, i32) {
    %c0_i32 = arith.constant 0 : i32
    %c0_i32_0 = arith.constant 0 : i32
    %c0_i32_1 = arith.constant 0 : i32
    return %c0_i32, %c0_i32_0 : i32, i32
  }
  func.func @transform_2(%arg0: i32) -> (i32, i32) {
    %c0_i32 = arith.constant 0 : i32
    %c0_i32_0 = arith.constant 0 : i32
    %c0_i32_1 = arith.constant 0 : i32
    return %c0_i32, %c0_i32_0 : i32, i32
  }
  func.func @transform_3(%arg0: i32) -> (i32, i32) {
    %c0_i32 = arith.constant 0 : i32
    %c0_i32_0 = arith.constant 0 : i32
    %c0_i32_1 = arith.constant 0 : i32
    return %c0_i32, %c0_i32_0 : i32, i32
  }
  func.func @transform_4(%arg0: i32) -> (i32, i32) {
    %c0_i32 = arith.constant 0 : i32
    %c0_i32_0 = arith.constant 0 : i32
    %c0_i32_1 = arith.constant 0 : i32
    return %c0_i32, %c0_i32_0 : i32, i32
  }
  func.func @transform_5(%arg0: i32) -> (i32, i32) {
    %c0_i32 = arith.constant 0 : i32
    %c0_i32_0 = arith.constant 0 : i32
    %c0_i32_1 = arith.constant 0 : i32
    return %c0_i32, %c0_i32_0 : i32, i32
  }
  func.func @transform_6(%arg0: i32) -> (i32, i32) {
    %c0_i32 = arith.constant 0 : i32
    %c0_i32_0 = arith.constant 0 : i32
    %c0_i32_1 = arith.constant 0 : i32
    return %c0_i32, %c0_i32_0 : i32, i32
  }
  func.func @transform_7(%arg0: i32) -> (i32, i32) {
    %c0_i32 = arith.constant 0 : i32
    %c0_i32_0 = arith.constant 0 : i32
    %c0_i32_1 = arith.constant 0 : i32
    return %c0_i32, %c0_i32_0 : i32, i32
  }
  func.func @transform_8(%arg0: i32) -> (i32, i32) {
    %c0_i32 = arith.constant 0 : i32
    %c0_i32_0 = arith.constant 0 : i32
    return %arg0, %c0_i32 : i32, i32
  }
}

module attributes {stable_mosaic.version = 11 : i64} {
  func.func @fourier_block_kernel(%arg0: i32, %arg1: memref<8x32xf32, #tpu.memory_space<vmem>>, %arg2: memref<32x32xbf16, #tpu.memory_space<vmem>>, %arg3: memref<1x32xf32, #tpu.memory_space<vmem>>, %arg4: memref<1x32xf32, #tpu.memory_space<vmem>>, %arg5: memref<32x32xbf16, #tpu.memory_space<vmem>>, %arg6: memref<1x32xf32, #tpu.memory_space<vmem>>, %arg7: memref<32x32xbf16, #tpu.memory_space<vmem>>, %arg8: memref<1x32xf32, #tpu.memory_space<vmem>>, %arg9: memref<8x32xf32, #tpu.memory_space<vmem>>) attributes {dimension_semantics = [#tpu.dimension_semantics<parallel>], iteration_bounds = array<i64: 2>, scalar_prefetch = 0 : i64, scratch_operands = 0 : i64, tpu.core_type = #tpu.core_type<tc>, window_params = [{transform_indices = @transform_0, window_bounds = array<i64: 8, 32>}, {pipeline_mode = #tpu.pipeline_mode<synchronous>, transform_indices = @transform_1, window_bounds = array<i64: 32, 32>}, {pipeline_mode = #tpu.pipeline_mode<synchronous>, transform_indices = @transform_2, window_bounds = array<i64: 1, 32>}, {pipeline_mode = #tpu.pipeline_mode<synchronous>, transform_indices = @transform_3, window_bounds = array<i64: 1, 32>}, {pipeline_mode = #tpu.pipeline_mode<synchronous>, transform_indices = @transform_4, window_bounds = array<i64: 32, 32>}, {pipeline_mode = #tpu.pipeline_mode<synchronous>, transform_indices = @transform_5, window_bounds = array<i64: 1, 32>}, {pipeline_mode = #tpu.pipeline_mode<synchronous>, transform_indices = @transform_6, window_bounds = array<i64: 32, 32>}, {pipeline_mode = #tpu.pipeline_mode<synchronous>, transform_indices = @transform_7, window_bounds = array<i64: 1, 32>}, {transform_indices = @transform_8, window_bounds = array<i64: 8, 32>}]} {
    %c0 = arith.constant 0 : index
    %c0_0 = arith.constant 0 : index
    %0 = vector.load %arg3[%c0, %c0_0] : memref<1x32xf32, #tpu.memory_space<vmem>>, vector<1x32xf32>
    %c0_1 = arith.constant 0 : index
    %c0_2 = arith.constant 0 : index
    %1 = vector.load %arg4[%c0_1, %c0_2] : memref<1x32xf32, #tpu.memory_space<vmem>>, vector<1x32xf32>
    %c0_3 = arith.constant 0 : index
    %c0_4 = arith.constant 0 : index
    %2 = vector.load %arg6[%c0_3, %c0_4] : memref<1x32xf32, #tpu.memory_space<vmem>>, vector<1x32xf32>
    %c0_5 = arith.constant 0 : index
    %c0_6 = arith.constant 0 : index
    %3 = vector.load %arg8[%c0_5, %c0_6] : memref<1x32xf32, #tpu.memory_space<vmem>>, vector<1x32xf32>
    %c0_7 = arith.constant 0 : index
    %c0_8 = arith.constant 0 : index
    %4 = vector.load %arg1[%c0_7, %c0_8] : memref<8x32xf32, #tpu.memory_space<vmem>>, vector<8x32xf32>
    %5 = arith.truncf %4 : vector<8x32xf32> to vector<8x32xbf16>
    %c0_9 = arith.constant 0 : index
    %c0_10 = arith.constant 0 : index
    %6 = vector.load %arg2[%c0_9, %c0_10] : memref<32x32xbf16, #tpu.memory_space<vmem>>, vector<32x32xbf16>
    %cst = arith.constant dense<0.000000e+00> : vector<8x32xf32>
    %7 = tpu.matmul %5, %6, %cst {dimension_numbers = #tpu.dot_dimension_numbers<[1], [0], [0], [1], [0, 0, 1, 1], [], []>} : vector<8x32xbf16>, vector<32x32xbf16>, vector<8x32xf32> -> vector<8x32xf32>
    %cst_11 = arith.constant dense<0.000000e+00> : vector<8xf32>
    %8 = vector.multi_reduction <add>, %7, %cst_11 [1] : vector<8x32xf32> to vector<8xf32>
    %9 = vector.shape_cast %8 : vector<8xf32> to vector<8x1xf32>
    %cst_12 = arith.constant 3.200000e+01 : f32
    %10 = vector.broadcast %cst_12 : f32 to vector<8x1xf32>
    %11 = arith.divf %9, %10 : vector<8x1xf32>
    %12 = vector.broadcast %11 : vector<8x1xf32> to vector<8x32xf32>
    %13 = arith.subf %7, %12 : vector<8x32xf32>
    %14 = arith.mulf %13, %13 : vector<8x32xf32>
    %cst_13 = arith.constant dense<0.000000e+00> : vector<8xf32>
    %15 = vector.multi_reduction <add>, %14, %cst_13 [1] : vector<8x32xf32> to vector<8xf32>
    %16 = vector.shape_cast %15 : vector<8xf32> to vector<8x1xf32>
    %cst_14 = arith.constant 3.200000e+01 : f32
    %17 = vector.broadcast %cst_14 : f32 to vector<8x1xf32>
    %18 = arith.divf %16, %17 : vector<8x1xf32>
    %cst_15 = arith.constant 9.99999974E-6 : f32
    %19 = vector.broadcast %cst_15 : f32 to vector<8x1xf32>
    %20 = arith.addf %18, %19 : vector<8x1xf32>
    %21 = math.rsqrt %20 : vector<8x1xf32>
    %22 = vector.broadcast %21 : vector<8x1xf32> to vector<8x32xf32>
    %23 = arith.mulf %13, %22 : vector<8x32xf32>
    %24 = arith.truncf %23 : vector<8x32xf32> to vector<8x32xbf16>
    %c0_16 = arith.constant 0 : index
    %c0_17 = arith.constant 0 : index
    %25 = vector.load %arg5[%c0_16, %c0_17] : memref<32x32xbf16, #tpu.memory_space<vmem>>, vector<32x32xbf16>
    %cst_18 = arith.constant dense<0.000000e+00> : vector<8x32xf32>
    %26 = tpu.matmul %24, %25, %cst_18 {dimension_numbers = #tpu.dot_dimension_numbers<[1], [0], [0], [1], [0, 0, 1, 1], [], []>} : vector<8x32xbf16>, vector<32x32xbf16>, vector<8x32xf32> -> vector<8x32xf32>
    %27 = vector.broadcast %2 : vector<1x32xf32> to vector<8x32xf32>
    %28 = arith.addf %26, %27 : vector<8x32xf32>
    %29 = arith.truncf %28 : vector<8x32xf32> to vector<8x32xbf16>
    %cst_19 = arith.constant 5.000000e-01 : bf16
    %30 = vector.broadcast %cst_19 : bf16 to vector<8x32xbf16>
    %31 = arith.mulf %30, %29 : vector<8x32xbf16>
    %32 = arith.mulf %29, %29 : vector<8x32xbf16>
    %33 = arith.mulf %32, %29 : vector<8x32xbf16>
    %cst_20 = arith.constant 4.467770e-02 : bf16
    %34 = vector.broadcast %cst_20 : bf16 to vector<8x32xbf16>
    %35 = arith.mulf %34, %33 : vector<8x32xbf16>
    %36 = arith.addf %29, %35 : vector<8x32xbf16>
    %cst_21 = arith.constant 7.968750e-01 : bf16
    %37 = vector.broadcast %cst_21 : bf16 to vector<8x32xbf16>
    %38 = arith.mulf %37, %36 : vector<8x32xbf16>
    %39 = math.tanh %38 : vector<8x32xbf16>
    %cst_22 = arith.constant 1.000000e+00 : bf16
    %40 = vector.broadcast %cst_22 : bf16 to vector<8x32xbf16>
    %41 = arith.addf %40, %39 : vector<8x32xbf16>
    %42 = arith.mulf %31, %41 : vector<8x32xbf16>
    %c0_23 = arith.constant 0 : index
    %c0_24 = arith.constant 0 : index
    %43 = vector.load %arg7[%c0_23, %c0_24] : memref<32x32xbf16, #tpu.memory_space<vmem>>, vector<32x32xbf16>
    %cst_25 = arith.constant dense<0.000000e+00> : vector<8x32xf32>
    %44 = tpu.matmul %42, %43, %cst_25 {dimension_numbers = #tpu.dot_dimension_numbers<[1], [0], [0], [1], [0, 0, 1, 1], [], []>} : vector<8x32xbf16>, vector<32x32xbf16>, vector<8x32xf32> -> vector<8x32xf32>
    %45 = vector.broadcast %3 : vector<1x32xf32> to vector<8x32xf32>
    %46 = arith.addf %44, %45 : vector<8x32xf32>
    %cst_26 = arith.constant dense<0.000000e+00> : vector<8xf32>
    %47 = vector.multi_reduction <add>, %46, %cst_26 [1] : vector<8x32xf32> to vector<8xf32>
    %48 = vector.shape_cast %47 : vector<8xf32> to vector<8x1xf32>
    %cst_27 = arith.constant 3.200000e+01 : f32
    %49 = vector.broadcast %cst_27 : f32 to vector<8x1xf32>
    %50 = arith.divf %48, %49 : vector<8x1xf32>
    %51 = vector.broadcast %50 : vector<8x1xf32> to vector<8x32xf32>
    %52 = arith.subf %46, %51 : vector<8x32xf32>
    %53 = arith.mulf %52, %52 : vector<8x32xf32>
    %cst_28 = arith.constant dense<0.000000e+00> : vector<8xf32>
    %54 = vector.multi_reduction <add>, %53, %cst_28 [1] : vector<8x32xf32> to vector<8xf32>
    %55 = vector.shape_cast %54 : vector<8xf32> to vector<8x1xf32>
    %cst_29 = arith.constant 3.200000e+01 : f32
    %56 = vector.broadcast %cst_29 : f32 to vector<8x1xf32>
    %57 = arith.divf %55, %56 : vector<8x1xf32>
    %cst_30 = arith.constant 9.99999974E-6 : f32
    %58 = vector.broadcast %cst_30 : f32 to vector<8x1xf32>
    %59 = arith.addf %57, %58 : vector<8x1xf32>
    %60 = math.rsqrt %59 : vector<8x1xf32>
    %61 = vector.broadcast %60 : vector<8x1xf32> to vector<8x32xf32>
    %62 = arith.mulf %52, %61 : vector<8x32xf32>
    %63 = vector.broadcast %0 : vector<1x32xf32> to vector<8x32xf32>
    %64 = arith.mulf %62, %63 : vector<8x32xf32>
    %65 = vector.broadcast %1 : vector<1x32xf32> to vector<8x32xf32>
    %66 = arith.addf %64, %65 : vector<8x32xf32>
    %c0_31 = arith.constant 0 : index
    %c0_32 = arith.constant 0 : index
    %67 = vector.load %arg9[%c0_31, %c0_32] : memref<8x32xf32, #tpu.memory_space<vmem>>, vector<8x32xf32>
    tpu.vector_store %arg9[%c0_31, %c0_32], %66 {strides = array<i32>} : memref<8x32xf32, #tpu.memory_space<vmem>>, vector<8x32xf32>,
    return
  }
  func.func @transform_0(%arg0: i32) -> (i32, i32) {
    %c0_i32 = arith.constant 0 : i32
    %c0_i32_0 = arith.constant 0 : i32
    return %arg0, %c0_i32 : i32, i32
  }
  func.func @transform_1(%arg0: i32) -> (i32, i32) {
    %c0_i32 = arith.constant 0 : i32
    %c0_i32_0 = arith.constant 0 : i32
    %c0_i32_1 = arith.constant 0 : i32
    return %c0_i32, %c0_i32_0 : i32, i32
  }
  func.func @transform_2(%arg0: i32) -> (i32, i32) {
    %c0_i32 = arith.constant 0 : i32
    %c0_i32_0 = arith.constant 0 : i32
    %c0_i32_1 = arith.constant 0 : i32
    return %c0_i32, %c0_i32_0 : i32, i32
  }
  func.func @transform_3(%arg0: i32) -> (i32, i32) {
    %c0_i32 = arith.constant 0 : i32
    %c0_i32_0 = arith.constant 0 : i32
    %c0_i32_1 = arith.constant 0 : i32
    return %c0_i32, %c0_i32_0 : i32, i32
  }
  func.func @transform_4(%arg0: i32) -> (i32, i32) {
    %c0_i32 = arith.constant 0 : i32
    %c0_i32_0 = arith.constant 0 : i32
    %c0_i32_1 = arith.constant 0 : i32
    return %c0_i32, %c0_i32_0 : i32, i32
  }
  func.func @transform_5(%arg0: i32) -> (i32, i32) {
    %c0_i32 = arith.constant 0 : i32
    %c0_i32_0 = arith.constant 0 : i32
    %c0_i32_1 = arith.constant 0 : i32
    return %c0_i32, %c0_i32_0 : i32, i32
  }
  func.func @transform_6(%arg0: i32) -> (i32, i32) {
    %c0_i32 = arith.constant 0 : i32
    %c0_i32_0 = arith.constant 0 : i32
    %c0_i32_1 = arith.constant 0 : i32
    return %c0_i32, %c0_i32_0 : i32, i32
  }
  func.func @transform_7(%arg0: i32) -> (i32, i32) {
    %c0_i32 = arith.constant 0 : i32
    %c0_i32_0 = arith.constant 0 : i32
    %c0_i32_1 = arith.constant 0 : i32
    return %c0_i32, %c0_i32_0 : i32, i32
  }
  func.func @transform_8(%arg0: i32) -> (i32, i32) {
    %c0_i32 = arith.constant 0 : i32
    %c0_i32_0 = arith.constant 0 : i32
    return %arg0, %c0_i32 : i32, i32
  }
}

</mosaic_0001>

<bundles_post_ra>
// kernel: tpu_custom_call.1
= control target key start
LH: loop header
LB: loop body
LE: loop exit
PB: predicated region body
PF: predicated region fallthrough
CT: control target
= control target key end

     0   :  { %13 = vsyncpa [#allocation3], 0  ;;  %s1322_s0 = inlined_call_operand.hbm [shape: f32[16,32], index: 0, kind: input, shape index: {}]   ;;  %s1323_s1 = inlined_call_operand.hbm [shape: bf16[32,32], index: 1, kind: input, shape index: {}]   ;;  %s1324_s2 = inlined_call_operand.vmem [shape: f32[1,32], index: 2, kind: input, shape index: {}]   ;;  %s1325_s3 = inlined_call_operand.vmem [shape: f32[1,32], index: 3, kind: input, shape index: {}]   ;;  %s1326_s4 = inlined_call_operand.hbm [shape: bf16[32,32], index: 4, kind: input, shape index: {}]   ;;  %s1327_s5 = inlined_call_operand.vmem [shape: f32[1,32], index: 5, kind: input, shape index: {}]   ;;  %s1328_s6 = inlined_call_operand.vmem [shape: bf16[32,32], index: 6, kind: input, shape index: {}]   ;;  %s1329_s7 = inlined_call_operand.vmem [shape: f32[1,32], index: 7, kind: input, shape index: {}]   ;;  %s1330_s8 = inlined_call_operand.hbm [shape: f32[16,32], index: 8, kind: output, shape index: {}]  }
   0x1   :  { %15 = vsyncpa [#allocation3 + $0x1], 0 }
   0x2   :  { %16 = vsyncpa [#allocation6], 0 }
   0x3   :  { %17 = vsyncpa [#allocation4], 0 }
   0x4   :  { %19 = vsyncpa [#allocation4 + $0x1], 0  ;;  %s1063_s27 = smov 0   ;;  %s1065_s28 = smov 0  }
   0x5   :  { %s1067_s29 = smov 0   ;;  %s1069_s30 = smov 0  }
   0x6 LB: > { %s1084_s9 = sadd.s32 4294967295, %s1008_s30   ;;  %s707_s10 = sadd.s32 4294967294, %s1008_s30   ;;  %s1008_s30 = sphi %s1069_s30, %s1350_s30   ;;  %s1004_s29 = sphi %s1067_s29, %s1349_s29   ;;  %s1000_s28 = sphi %s1065_s28, %s1348_s28   ;;  %s996_s27 = sphi %s1063_s27, %s1347_s27  }
   0x7   : > { %p45_p0 = scmp.ne.s32.totalorder %s1000_s28, %s996_s27  ;;  %p1331_p1 = scmp.eq.s32.totalorder %s1084_s9, 0 }
   0x8   : > { %p222_p3 = scmp.eq.s32.totalorder %s707_s10, 1  ;;  %p708_p5 = scmp.ge.s32.totalorder %s1008_s30, 1 }
   0x9   : > { %p1093_p4 = por %p1331_p1, %p45_p0  ;;  %p229_p7 = scmp.lt.s32.totalorder %s1008_s30, 3 }
   0xa   : > { %p1098_p6 = por %p222_p3, %p45_p0  ;;  %s1010_s14 = smov [#allocation5]  }
   0xb   : > { %s1334_s11 = scalar_select %p1093_p4, 1, 0 }
   0xc   : > { %s1335_s12 = scalar_select %p1098_p6, 1, 0 }
   0xd   : > { %p1103_p8 = pnand %p708_p5, %p229_p7  ;;  %s241_s15 = sshll.u32 %s1010_s14, 4  ;;  %s1107_s15 = int_to_ptr.vmem [resolvable:$true] %s241_s15 }
   0xe   : > { %s1011_s17 = smov [#allocation7]   ;;  %s852_s21 = scalar_lea.hbm %s1323_s1, 256 }
   0xf   : > { %p781_p9 = pneg %p1103_p8  ;;  %s260_s18 = sshll.u32 %s1011_s17, 4  ;;  %s1118_s18 = int_to_ptr.vmem [resolvable:$true] %s260_s18 }
  0x10   : > { %p853_p12 = scmp.ne.s32.totalorder %s1323_s1, %s852_s21  ;;  %p859_p5 = scmp.lt.u32.totalorder %s852_s21, %s1323_s1 }
  0x11   : > { %p1114_p11 = pnand %p781_p9, %p1331_p1 }
  0x13   : > { %p854_p13 = pneg %p1114_p11 }
  0x15   : > { %p855_p0 = pnand %p854_p13, %p853_p12 }
  0x17   : > { %p856_p3 = pneg %p855_p0 }
  0x19   : > { %p861_p7 = pnand %p859_p5, %p856_p3 }
  0x1b   : > { %864 = shalt.err (!%p861_p7)
}
  0x1c   : > { %s865_s26 = scalar_lea.vmem %s1107_s15, 256  ;;  %p873_p2 = scmp.lt.s32.totalorder %s1107_s15, %s1107_s15 }
  0x1d   : > { %p866_p9 = scmp.ne.s32.totalorder %s1107_s15, %s865_s26  ;;  %p874_p12 = scmp.lt.s32.totalorder %s865_s26, %s865_s26 }
  0x1f   : > { %p868_p10 = pnand %p866_p9, %p854_p13  ;;  %p875_p0 = por %p874_p12, %p873_p2 }
  0x21   : > { %p869_p1 = pneg %p868_p10 }
  0x23   : > { %p876_p6 = pnand %p875_p0, %p869_p1 }
  0x25   : > { %879 = shalt.err (!%p876_p6)
}
  0x26   : > { %s1012_s10 = smov 64   ;;  %s1013_s14 = smov 4  }
  0x27   : > { %784 = dma.hbm_to_vmem [thread:$0]  (!%p1114_p11), %s1323_s1, 256, %s1107_s15, [#allocation6], %s1012_s10, %s1012_s10, %s1013_s14  }
  0x28   : > { %s880_s22 = scalar_lea.hbm %s1326_s4, 256 }
  0x29   : > { %p881_p2 = scmp.ne.s32.totalorder %s1326_s4, %s880_s22  ;;  %p887_p10 = scmp.lt.u32.totalorder %s880_s22, %s1326_s4 }
  0x2b   : > { %p883_p1 = pnand %p881_p2, %p854_p13 }
  0x2d   : > { %p884_p6 = pneg %p883_p1 }
  0x2f   : > { %p889_p3 = pnand %p887_p10, %p884_p6 }
  0x31   : > { %892 = shalt.err (!%p889_p3)
}
  0x32   : > { %s893_s15 = scalar_lea.vmem %s1118_s18, 256  ;;  %p901_p12 = scmp.lt.s32.totalorder %s1118_s18, %s1118_s18 }
  0x33   : > { %p894_p5 = scmp.ne.s32.totalorder %s1118_s18, %s893_s15  ;;  %p902_p0 = scmp.lt.s32.totalorder %s893_s15, %s893_s15 }
  0x35   : > { %p896_p7 = pnand %p894_p5, %p854_p13  ;;  %p903_p2 = por %p902_p0, %p901_p12 }
  0x37   : > { %p897_p9 = pneg %p896_p7 }
  0x39   : > { %p904_p1 = pnand %p903_p2, %p897_p9 }
  0x3b   : > { %907 = shalt.err (!%p904_p1)
}
  0x3c   : > { %787 = dma.hbm_to_vmem [thread:$0]  (!%p1114_p11), %s1326_s4, 256, %s1118_s18, [#allocation6], %s1012_s10, %s1012_s10, %s1013_s14  }
  0x3d   : > { %s1173_s20 = sadd.s32 1, %s1008_s30   ;;  %s32_s16 = sadd.s32 1, %s1004_s29 }
  0x3e   : > { %s29_s21 = ssub.s32 %s1008_s30, %s1173_s20  ;;  %p39_p13 = scmp.ne.s32.totalorder %s1004_s29, %s1000_s28 }
  0x3f   : > { %p30_p6 = scmp.eq.s32.totalorder %s29_s21, 0  ;;  %p40_p10 = scmp.eq.s32.totalorder %s1008_s30, 0 }
  0x40   : > { %p1338_p3 = scmp.eq.s32.totalorder %s1084_s9, 1  ;;  %p798_p7 = scmp.lt.s32.totalorder %s1008_s30, 2 }
  0x41   : > { %s1189_s23 = scalar_select %p30_p6, %s1004_s29, %s32_s16  }
  0x42   : > { %p1183_p5 = por %p1338_p3, %p39_p13  ;;  %p41_p9 = por %p40_p10, %p39_p13 }
  0x43   : > { %s283_s24 = sand.u32 1, %s1004_s29   ;;  %s713_s18 = sshll.u32 %s1008_s30, 7 }
  0x44   : > { %s1339_s22 = scalar_select %p1183_p5, 1, 0 }
  0x45   : > { %s712_s25 = sshll.u32 %s283_s24, 3  ;;  %s1196_s26 = scalar_lea.hbm %s1322_s0, %s713_s18 }
  0x46   : > { %s287_s15 = scalar_lea.vmem [#allocation2], %s712_s25  ;;  %p1200_p11 = pnand %p798_p7, %p41_p9 }
  0x47   : > { %s294_s17 = sshll.u32 %s287_s15, 4  ;;  %s284_s16 = scalar_lea.sflag [#allocation3], %s283_s24  ;;  %s1198_s17 = int_to_ptr.vmem [resolvable:$true] %s294_s17 }
  0x48   : > { %s908_s21 = scalar_lea.hbm %s1196_s26, 128  ;;  %p910_p0 = pneg %p1200_p11 }
  0x49   : > { %p909_p12 = scmp.ne.s32.totalorder %s1196_s26, %s908_s21  ;;  %s913_s10 = scalar_lea.hbm %s1322_s0, 256 }
  0x4a   : > { %p914_p13 = scmp.lt.u32.totalorder %s1196_s26, %s1322_s0  ;;  %p915_p6 = scmp.lt.u32.totalorder %s913_s10, %s908_s21 }
  0x4b   : > { %p911_p2 = pnand %p910_p0, %p909_p12  ;;  %p917_p3 = scmp.lt.u32.totalorder %s908_s21, %s1196_s26 }
  0x4c   : > { %p916_p10 = por %p915_p6, %p914_p13 }
  0x4d   : > { %p912_p1 = pneg %p911_p2 }
  0x4e   : > { %p918_p7 = por %p917_p3, %p916_p10 }
  0x50   : > { %p919_p9 = pnand %p918_p7, %p912_p1 }
  0x52   : > { %922 = shalt.err (!%p919_p9)
}
  0x53   : > { %s923_s24 = scalar_lea.vmem %s1198_s17, 128  ;;  %s1014_s18 = smov [#allocation2]  }
  0x54   : > { %p924_p12 = scmp.ne.s32.totalorder %s1198_s17, %s923_s24  ;;  %s928_s25 = sshll.u32 %s1014_s18, 4  ;;  %s929_s25 = int_to_ptr.vmem [resolvable:$false] %s928_s25 }
  0x55   : > { %s930_s14 = scalar_lea.vmem %s929_s25, 256  ;;  %p931_p4 = scmp.lt.s32.totalorder %s1198_s17, %s929_s25 }
  0x56   : > { %p926_p2 = pnand %p924_p12, %p910_p0  ;;  %p932_p13 = scmp.lt.s32.totalorder %s930_s14, %s923_s24 }
  0x58   : > { %p927_p5 = pneg %p926_p2  ;;  %p933_p6 = por %p932_p13, %p931_p4 }
  0x5a   : > { %p934_p10 = pnand %p933_p6, %p927_p5 }
  0x5c   : > { %937 = shalt.err (!%p934_p10)
}
  0x5d   : > { %791 = dma.hbm_to_vmem [thread:$0]  (!%p1200_p11), %s1196_s26, 128, %s1198_s17, %s284_s16  }
  0x5e   : > { %303 = sbr.rel (%p1103_p8) target bundleno = 1421 (0x58d), region = 52  ;;  %s1232_s21 = sand.u32 (!%p1103_p8), 1, %s1000_s28  }
  0x5f   : > { %s715_s10 = sshll.u32 (!%p1103_p8), %s1232_s21, 3  ;;  %s306_s15 = scalar_lea.sflag (!%p1103_p8), [#allocation3], %s1232_s21 }
  0x60   : > { %s309_s24 = scalar_lea.vmem (!%p1103_p8), [#allocation2], %s715_s10  ;;  %p1341_p4 = scmp.ne.s32.totalorder (!%p1103_p8), %s1334_s11, 0 }
  0x65   : > { %983 = dma.done.wait (%p1341_p4), %s306_s15, 128  }
  0x66   : > { %985 = vsyncadd (%p1341_p4), %s306_s15, 4294967168  ;;  %p1342_p5 = scmp.eq.s32.totalorder %s1084_s9, 0 }
  0x68   : > { %987 = dma.done.wait (%p1342_p5), [#allocation6], 512   ;;  %p1343_p8 = pmov %p1342_p5 }
  0x69   : > { %v1015_v0 = vmov 0.0   ;;  %vm1016_vm0 = vmmov 0   ;;  %v840_v1 = vld [vmem:[#allocation5] sm:$0xff]   ;;  %v841_v2 = vld [vmem:[#allocation5 + $0x8] sm:$0xff]   ;;  %v359_v3 = vld [vmem:[%s309_s24] sm:$0xff]  ;;  %vm377_vm1 = vcmask 261120  }
  0x6a   : > { %989 = vsyncadd (%p1343_p8), [#allocation6], 4294966784  ;;  %745 = vmatprep.subr.bf16.mxu0 %v1015_v0  ;;  %749 = vmatprep.mubr.msk.bf16.mxu0 %vm1016_vm0, %v1015_v0  ;;  %v360_v4 = vpack.c.bf16 %v359_v3, %v359_v3  ;;  %v842_v15 = vld [vmem:[#allocation7] sm:$0xff]   ;;  %v843_v16 = vld [vmem:[#allocation7 + $0x8] sm:$0xff]   ;;  %s733_s13 = sshll.u32 %s1084_s9, 7  ;;  %s349_s26 = scalar_lea.vmem [#allocation8], %s715_s10 }
  0x6b   : > { %753 = vmatprep.subr.bf16.mxu1 %v1015_v0  ;;  %757 = vmatprep.mubr.msk.bf16.mxu1 %vm1016_vm0, %v1015_v0  ;;  %v844_v23 = vld [vmem:[%s1328_s6] sm:$0xff]   ;;  %v845_v24 = vld [vmem:[%s1328_s6 + $0x8] sm:$0xff]   ;;  %s618_s17 = sshll.u32 %s349_s26, 4  ;;  %s1277_s18 = scalar_lea.hbm %s1330_s8, %s733_s13  ;;  %s1279_s17 = int_to_ptr.vmem [resolvable:$true] %s618_s17 }
  0x6c   : > { %746 = vmatpush3.bf16.msra.mxu0 %v840_v1  ;;  %754 = vmatpush3.bf16.msra.mxu1 %v842_v15  ;;  %v722_v25 = vld [vmem:[%s1327_s5] ss:$0 sm:$0xff]  ;;  %s605_s25 = scalar_lea.sflag [#allocation4], %s1232_s21  ;;  %s938_s14 = scalar_lea.vmem %s1279_s17, 128 }
  0x6d   : > { %747 = vmatprep.subr.bf16.mxu0 %v1015_v0  ;;  %755 = vmatprep.subr.bf16.mxu1 %v1015_v0  ;;  %v726_v41 = vld [vmem:[%s1329_s7] ss:$0 sm:$0xff]  ;;  %p939_p11 = scmp.ne.s32.totalorder %s1279_s17, %s938_s14  ;;  %p1344_p0 = scmp.ne.s32.totalorder %s1339_s22, 0 }
  0x6e   : > { %v730_v57 = vld [vmem:[%s1324_s2] ss:$0 sm:$0xff]  ;;  %s1017_s9 = smov [#allocation8]  }
  0x6f   : > { %v731_v59 = vld [vmem:[%s1325_s3] ss:$0 sm:$0xff]  ;;  %p940_p1 = pnand %p939_p11, %p1344_p0  ;;  %s942_s10 = sshll.u32 %s1017_s9, 4  ;;  %s943_s10 = int_to_ptr.vmem [resolvable:$false] %s942_s10 }
  0x70   : > { %748 = vmatpush3.bf16.msra.mxu0 %v841_v2  ;;  %756 = vmatpush3.bf16.msra.mxu1 %v843_v16  ;;  %s944_s15 = scalar_lea.vmem %s943_s10, 256  ;;  %p945_p7 = scmp.lt.s32.totalorder %s1279_s17, %s943_s10 }
  0x71   : > { %761 = vmatprep.subr.bf16.mxu0 %v1015_v0  ;;  %p941_p3 = pneg %p940_p1  ;;  %p946_p9 = scmp.lt.s32.totalorder %s944_s15, %s938_s14 }
  0x73   : > { %750 = vmatmul.mubr.msk.bf16.vlgmr.msra.gmra.mrb[0].mxu0 %vm377_vm1, %v360_v4  ;;  %p947_p12 = por %p946_p9, %p945_p7 }
  0x74   : > { %765 = vmatprep.mubr.msk.bf16.mxu0 %vm1016_vm0, %v1015_v0  ;;  %762 = vmatpush3.bf16.msra.mxu0 %v844_v23 }
  0x75   : > { %763 = vmatprep.subr.bf16.mxu0 %v1015_v0  ;;  %p948_p2 = pnand %p947_p12, %p941_p3 }
  0x78   : > { %764 = vmatpush3.bf16.msra.mxu0 %v845_v24 }
 0x146   : > { %v415_v5 = vpop.f32.mrb[0].mxu0 }
 0x147   : > { %v751_v6 = vpop.f32.mrb[1].mxu0  ;;  %v421_v7 = vsel %vm377_vm1, %v415_v5, 0.0 }
 0x148   : > { %422 = vadd.xlane.f32.xlu0 %v421_v7  ;;  %v418_v8 = vpop.f32.mrb[2].mxu0 }
 0x149   : > { %v752_v9 = vpop.f32.mrb[3].mxu0 }
 0x1d5   : > { %v423_v10 = vpop.xlane.xlu0 %422 }
 0x1d6   : > { %v425_v11 = vmul.f32 0.03125, %v423_v10 }
 0x1d8   : > { %v426_v12 = vsub.f32 %v415_v5, %v425_v11 }
 0x1da   : > { %v427_v13 = vmul.f32 %v426_v12, %v426_v12 }
 0x1dc   : > { %v428_v14 = vsel %vm377_vm1, %v427_v13, 0.0 }
 0x1dd   : > { %429 = vadd.xlane.f32.xlu0 %v428_v14 }
 0x26a   : > { %v430_v17 = vpop.xlane.xlu0 %429 }
 0x26b   : > { %v431_v18 = vmul.f32 0.03125, %v430_v17 }
 0x26d   : > { %v432_v19 = vadd.f32 1e-05, %v431_v18 }
 0x26f   : > { %846 = vrsqrt.f32 %v432_v19 }
 0x279   : > { %v847_v20 = vpop.eup %846 }
 0x27a   : > { %v434_v21 = vmul.f32 %v847_v20, %v426_v12 }
 0x27c   : > { %v435_v22 = vpack.c.bf16 %v434_v21, %v434_v21 }
 0x27e   : > { %758 = vmatmul.mubr.msk.bf16.vlgmr.msra.gmra.mrb[0].mxu1 %vm377_vm1, %v435_v22 }
 0x351   : > { %v495_v26 = vpop.f32.mrb[0].mxu1 }
 0x352   : > { %v496_v27 = vadd.f32 %v722_v25, %v495_v26  ;;  %v759_v28 = vpop.f32.mrb[1].mxu1 }
 0x353   : > { %v498_v29 = vpop.f32.mrb[2].mxu1 }
 0x354   : > { %v501_v30 = vpack.c.bf16 %v496_v27, %v496_v27  ;;  %v760_v31 = vpop.f32.mrb[3].mxu1 }
 0x356   : > { %v503_v32 = vmul.bf16 %v501_v30, %v501_v30  ;;  %v502_v38 = vmul.bf16 1056980736, %v501_v30 }
 0x358   : > { %v504_v33 = vmul.bf16 %v503_v32, %v501_v30 }
 0x35a   : > { %v505_v34 = vmul.bf16 1027030327, %v504_v33 }
 0x35c   : > { %v506_v35 = vadd.bf16 %v505_v34, %v501_v30 }
 0x35e   : > { %v507_v36 = vmul.bf16 1061961548, %v506_v35 }
 0x360   : > { %848 = vtanh.bf16 %v507_v36 }
 0x36b   : > { %v849_v37 = vpop.eup %848 }
 0x36c   : > { %v509_v39 = vadd.bf16 1065369472, %v849_v37 }
 0x36e   : > { %v510_v40 = vmul.bf16 %v509_v39, %v502_v38 }
 0x370   : > { %766 = vmatmul.mubr.msk.bf16.vlgmr.msra.gmra.mrb[4].mxu0 %vm377_vm1, %v510_v40 }
 0x443   : > { %v570_v42 = vpop.f32.mrb[4].mxu0 }
 0x444   : > { %v571_v43 = vadd.f32 %v726_v41, %v570_v42  ;;  %v767_v44 = vpop.f32.mrb[5].mxu0 }
 0x445   : > { %v573_v45 = vpop.f32.mrb[6].mxu0 }
 0x446   : > { %v768_v46 = vpop.f32.mrb[7].mxu0  ;;  %v576_v47 = vsel %vm377_vm1, %v571_v43, 0.0 }
 0x447   : > { %577 = vadd.xlane.f32.xlu1 %v576_v47 }
 0x4d4   : > { %v578_v48 = vpop.xlane.xlu1 %577 }
 0x4d5   : > { %v579_v49 = vmul.f32 0.03125, %v578_v48 }
 0x4d7   : > { %v580_v50 = vsub.f32 %v571_v43, %v579_v49 }
 0x4d9   : > { %v581_v51 = vmul.f32 %v580_v50, %v580_v50 }
 0x4db   : > { %v582_v52 = vsel %vm377_vm1, %v581_v51, 0.0 }
 0x4dc   : > { %583 = vadd.xlane.f32.xlu1 %v582_v52 }
 0x569   : > { %v584_v53 = vpop.xlane.xlu1 %583 }
 0x56a   : > { %v585_v54 = vmul.f32 0.03125, %v584_v53 }
 0x56c   : > { %v586_v55 = vadd.f32 1e-05, %v585_v54 }
 0x56e   : > { %850 = vrsqrt.f32 %v586_v55 }
 0x578   : > { %v851_v56 = vpop.eup %850 }
 0x579   : > { %v588_v58 = vmul.f32 %v851_v56, %v580_v50 }
 0x57b   : > { %v595_v60 = vmul.f32 %v730_v57, %v588_v58 }
 0x57d   : > { %v602_v61 = vadd.f32 %v731_v59, %v595_v60 }
 0x57f   : > { %603 = vst.msk [vmem:[%s349_s26] sm:$0xff] %vm377_vm1, %v602_v61 }
 0x580   : > { %951 = shalt.err (!%p948_p2)
}
 0x581   : > { %s952_s21 = scalar_lea.hbm %s1277_s18, 128  ;;  %s956_s13 = scalar_lea.hbm %s1330_s8, 256 }
 0x582   : > { %p953_p13 = scmp.ne.s32.totalorder %s1277_s18, %s952_s21  ;;  %p957_p4 = scmp.lt.u32.totalorder %s1277_s18, %s1330_s8 }
 0x583   : > { %p958_p5 = scmp.lt.u32.totalorder %s956_s13, %s952_s21  ;;  %p960_p11 = scmp.lt.u32.totalorder %s952_s21, %s1277_s18 }
 0x584   : > { %p954_p6 = pnand %p953_p13, %p1344_p0 }
 0x585   : > { %p959_p8 = por %p958_p5, %p957_p4 }
 0x586   : > { %p955_p10 = pneg %p954_p6 }
 0x587   : > { %p961_p1 = por %p960_p11, %p959_p8 }
 0x589   : > { %p962_p3 = pnand %p961_p1, %p955_p10 }
 0x58b   : > { %965 = shalt.err (!%p962_p3)
}
 0x58c   : > { %779 = dma.vmem_to_hbm [thread:$0]  (%p1344_p0), %s1279_s17, 128, %s1277_s18, %s605_s25  }
 0x58d PF: > { %s630_s16 = sand.u32 1, %s996_s27   ;;  %p1345_p7 = scmp.ne.s32.totalorder %s1335_s12, 0 }
 0x58e   : > { %p1346_p9 = scmp.ge.s32.totalorder %s1008_s30, 2  ;;  %s631_s14 = scalar_lea.sflag [#allocation4], %s630_s16 }
 0x590   : > { %p793_p12 = pnand %p1346_p9, %p1345_p7 }
 0x592   : > { %991 = dma.done.wait (!%p793_p12), %s631_s14, 128  }
 0x593   : > { %993 = vsyncadd (!%p793_p12), %s631_s14, 4294967168  ;;  %p22_p2 = scmp.ge.s32.totalorder %s1173_s20, 4   ;;  %s1347_s27 = smov %s1000_s28 }
 0x594   : > { %s1348_s28 = smov %s1004_s29  ;;  %s1349_s29 = smov %s1189_s23 }
 0x595   : > { %s1350_s30 = smov %s1173_s20  ;;  %24 = sbr.rel (!%p22_p2) target bundleno = 6 (0x6), region = 105 }
 0x59c   :  { %636 = vsyncpa [#allocation3], 1 }
 0x59d   :  { %638 = vsyncpa [#allocation3 + $0x1], 1 }
 0x59e   :  { %639 = vsyncpa [#allocation6], 1 }
 0x59f   :  { %640 = vsyncpa [#allocation4], 1 }
 0x5a0   :  { %642 = vsyncpa [#allocation4 + $0x1], 1 }

// kernel: tpu_custom_call.1
= control target key start
LH: loop header
LB: loop body
LE: loop exit
PB: predicated region body
PF: predicated region fallthrough
CT: control target
= control target key end

     0   :  { %13 = vsyncpa [#allocation3], 0  ;;  %s1322_s0 = inlined_call_operand.hbm [shape: f32[16,32], index: 0, kind: input, shape index: {}]   ;;  %s1323_s1 = inlined_call_operand.hbm [shape: bf16[32,32], index: 1, kind: input, shape index: {}]   ;;  %s1324_s2 = inlined_call_operand.vmem [shape: f32[1,32], index: 2, kind: input, shape index: {}]   ;;  %s1325_s3 = inlined_call_operand.vmem [shape: f32[1,32], index: 3, kind: input, shape index: {}]   ;;  %s1326_s4 = inlined_call_operand.hbm [shape: bf16[32,32], index: 4, kind: input, shape index: {}]   ;;  %s1327_s5 = inlined_call_operand.vmem [shape: f32[1,32], index: 5, kind: input, shape index: {}]   ;;  %s1328_s6 = inlined_call_operand.vmem [shape: bf16[32,32], index: 6, kind: input, shape index: {}]   ;;  %s1329_s7 = inlined_call_operand.vmem [shape: f32[1,32], index: 7, kind: input, shape index: {}]   ;;  %s1330_s8 = inlined_call_operand.hbm [shape: f32[16,32], index: 8, kind: output, shape index: {}]  }
   0x1   :  { %15 = vsyncpa [#allocation3 + $0x1], 0 }
   0x2   :  { %16 = vsyncpa [#allocation6], 0 }
   0x3   :  { %17 = vsyncpa [#allocation4], 0 }
   0x4   :  { %19 = vsyncpa [#allocation4 + $0x1], 0  ;;  %s1063_s27 = smov 0   ;;  %s1065_s28 = smov 0  }
   0x5   :  { %s1067_s29 = smov 0   ;;  %s1069_s30 = smov 0  }
   0x6 LB: > { %s1084_s9 = sadd.s32 4294967295, %s1008_s30   ;;  %s707_s10 = sadd.s32 4294967294, %s1008_s30   ;;  %s1008_s30 = sphi %s1069_s30, %s1350_s30   ;;  %s1004_s29 = sphi %s1067_s29, %s1349_s29   ;;  %s1000_s28 = sphi %s1065_s28, %s1348_s28   ;;  %s996_s27 = sphi %s1063_s27, %s1347_s27  }
   0x7   : > { %p45_p0 = scmp.ne.s32.totalorder %s1000_s28, %s996_s27  ;;  %p1331_p1 = scmp.eq.s32.totalorder %s1084_s9, 0 }
   0x8   : > { %p222_p3 = scmp.eq.s32.totalorder %s707_s10, 1  ;;  %p708_p5 = scmp.ge.s32.totalorder %s1008_s30, 1 }
   0x9   : > { %p1093_p4 = por %p1331_p1, %p45_p0  ;;  %p229_p7 = scmp.lt.s32.totalorder %s1008_s30, 3 }
   0xa   : > { %p1098_p6 = por %p222_p3, %p45_p0  ;;  %s1010_s14 = smov [#allocation5]  }
   0xb   : > { %s1334_s11 = scalar_select %p1093_p4, 1, 0 }
   0xc   : > { %s1335_s12 = scalar_select %p1098_p6, 1, 0 }
   0xd   : > { %p1103_p8 = pnand %p708_p5, %p229_p7  ;;  %s241_s15 = sshll.u32 %s1010_s14, 4  ;;  %s1107_s15 = int_to_ptr.vmem [resolvable:$true] %s241_s15 }
   0xe   : > { %s1011_s17 = smov [#allocation7]   ;;  %s852_s21 = scalar_lea.hbm %s1323_s1, 256 }
   0xf   : > { %p781_p9 = pneg %p1103_p8  ;;  %s260_s18 = sshll.u32 %s1011_s17, 4  ;;  %s1118_s18 = int_to_ptr.vmem [resolvable:$true] %s260_s18 }
  0x10   : > { %p853_p12 = scmp.ne.s32.totalorder %s1323_s1, %s852_s21  ;;  %p859_p5 = scmp.lt.u32.totalorder %s852_s21, %s1323_s1 }
  0x11   : > { %p1114_p11 = pnand %p781_p9, %p1331_p1 }
  0x13   : > { %p854_p13 = pneg %p1114_p11 }
  0x15   : > { %p855_p0 = pnand %p854_p13, %p853_p12 }
  0x17   : > { %p856_p3 = pneg %p855_p0 }
  0x19   : > { %p861_p7 = pnand %p859_p5, %p856_p3 }
  0x1b   : > { %864 = shalt.err (!%p861_p7)
}
  0x1c   : > { %s865_s26 = scalar_lea.vmem %s1107_s15, 256  ;;  %p873_p2 = scmp.lt.s32.totalorder %s1107_s15, %s1107_s15 }
  0x1d   : > { %p866_p9 = scmp.ne.s32.totalorder %s1107_s15, %s865_s26  ;;  %p874_p12 = scmp.lt.s32.totalorder %s865_s26, %s865_s26 }
  0x1f   : > { %p868_p10 = pnand %p866_p9, %p854_p13  ;;  %p875_p0 = por %p874_p12, %p873_p2 }
  0x21   : > { %p869_p1 = pneg %p868_p10 }
  0x23   : > { %p876_p6 = pnand %p875_p0, %p869_p1 }
  0x25   : > { %879 = shalt.err (!%p876_p6)
}
  0x26   : > { %s1012_s10 = smov 64   ;;  %s1013_s14 = smov 4  }
  0x27   : > { %784 = dma.hbm_to_vmem [thread:$0]  (!%p1114_p11), %s1323_s1, 256, %s1107_s15, [#allocation6], %s1012_s10, %s1012_s10, %s1013_s14  }
  0x28   : > { %s880_s22 = scalar_lea.hbm %s1326_s4, 256 }
  0x29   : > { %p881_p2 = scmp.ne.s32.totalorder %s1326_s4, %s880_s22  ;;  %p887_p10 = scmp.lt.u32.totalorder %s880_s22, %s1326_s4 }
  0x2b   : > { %p883_p1 = pnand %p881_p2, %p854_p13 }
  0x2d   : > { %p884_p6 = pneg %p883_p1 }
  0x2f   : > { %p889_p3 = pnand %p887_p10, %p884_p6 }
  0x31   : > { %892 = shalt.err (!%p889_p3)
}
  0x32   : > { %s893_s15 = scalar_lea.vmem %s1118_s18, 256  ;;  %p901_p12 = scmp.lt.s32.totalorder %s1118_s18, %s1118_s18 }
  0x33   : > { %p894_p5 = scmp.ne.s32.totalorder %s1118_s18, %s893_s15  ;;  %p902_p0 = scmp.lt.s32.totalorder %s893_s15, %s893_s15 }
  0x35   : > { %p896_p7 = pnand %p894_p5, %p854_p13  ;;  %p903_p2 = por %p902_p0, %p901_p12 }
  0x37   : > { %p897_p9 = pneg %p896_p7 }
  0x39   : > { %p904_p1 = pnand %p903_p2, %p897_p9 }
  0x3b   : > { %907 = shalt.err (!%p904_p1)
}
  0x3c   : > { %787 = dma.hbm_to_vmem [thread:$0]  (!%p1114_p11), %s1326_s4, 256, %s1118_s18, [#allocation6], %s1012_s10, %s1012_s10, %s1013_s14  }
  0x3d   : > { %s1173_s20 = sadd.s32 1, %s1008_s30   ;;  %s32_s16 = sadd.s32 1, %s1004_s29 }
  0x3e   : > { %s29_s21 = ssub.s32 %s1008_s30, %s1173_s20  ;;  %p39_p13 = scmp.ne.s32.totalorder %s1004_s29, %s1000_s28 }
  0x3f   : > { %p30_p6 = scmp.eq.s32.totalorder %s29_s21, 0  ;;  %p40_p10 = scmp.eq.s32.totalorder %s1008_s30, 0 }
  0x40   : > { %p1338_p3 = scmp.eq.s32.totalorder %s1084_s9, 1  ;;  %p798_p7 = scmp.lt.s32.totalorder %s1008_s30, 2 }
  0x41   : > { %s1189_s23 = scalar_select %p30_p6, %s1004_s29, %s32_s16  }
  0x42   : > { %p1183_p5 = por %p1338_p3, %p39_p13  ;;  %p41_p9 = por %p40_p10, %p39_p13 }
  0x43   : > { %s283_s24 = sand.u32 1, %s1004_s29   ;;  %s713_s18 = sshll.u32 %s1008_s30, 7 }
  0x44   : > { %s1339_s22 = scalar_select %p1183_p5, 1, 0 }
  0x45   : > { %s712_s25 = sshll.u32 %s283_s24, 3  ;;  %s1196_s26 = scalar_lea.hbm %s1322_s0, %s713_s18 }
  0x46   : > { %s287_s15 = scalar_lea.vmem [#allocation2], %s712_s25  ;;  %p1200_p11 = pnand %p798_p7, %p41_p9 }
  0x47   : > { %s294_s17 = sshll.u32 %s287_s15, 4  ;;  %s284_s16 = scalar_lea.sflag [#allocation3], %s283_s24  ;;  %s1198_s17 = int_to_ptr.vmem [resolvable:$true] %s294_s17 }
  0x48   : > { %s908_s21 = scalar_lea.hbm %s1196_s26, 128  ;;  %p910_p0 = pneg %p1200_p11 }
  0x49   : > { %p909_p12 = scmp.ne.s32.totalorder %s1196_s26, %s908_s21  ;;  %s913_s10 = scalar_lea.hbm %s1322_s0, 256 }
  0x4a   : > { %p914_p13 = scmp.lt.u32.totalorder %s1196_s26, %s1322_s0  ;;  %p915_p6 = scmp.lt.u32.totalorder %s913_s10, %s908_s21 }
  0x4b   : > { %p911_p2 = pnand %p910_p0, %p909_p12  ;;  %p917_p3 = scmp.lt.u32.totalorder %s908_s21, %s1196_s26 }
  0x4c   : > { %p916_p10 = por %p915_p6, %p914_p13 }
  0x4d   : > { %p912_p1 = pneg %p911_p2 }
  0x4e   : > { %p918_p7 = por %p917_p3, %p916_p10 }
  0x50   : > { %p919_p9 = pnand %p918_p7, %p912_p1 }
  0x52   : > { %922 = shalt.err (!%p919_p9)
}
  0x53   : > { %s923_s24 = scalar_lea.vmem %s1198_s17, 128  ;;  %s1014_s18 = smov [#allocation2]  }
  0x54   : > { %p924_p12 = scmp.ne.s32.totalorder %s1198_s17, %s923_s24  ;;  %s928_s25 = sshll.u32 %s1014_s18, 4  ;;  %s929_s25 = int_to_ptr.vmem [resolvable:$false] %s928_s25 }
  0x55   : > { %s930_s14 = scalar_lea.vmem %s929_s25, 256  ;;  %p931_p4 = scmp.lt.s32.totalorder %s1198_s17, %s929_s25 }
  0x56   : > { %p926_p2 = pnand %p924_p12, %p910_p0  ;;  %p932_p13 = scmp.lt.s32.totalorder %s930_s14, %s923_s24 }
  0x58   : > { %p927_p5 = pneg %p926_p2  ;;  %p933_p6 = por %p932_p13, %p931_p4 }
  0x5a   : > { %p934_p10 = pnand %p933_p6, %p927_p5 }
  0x5c   : > { %937 = shalt.err (!%p934_p10)
}
  0x5d   : > { %791 = dma.hbm_to_vmem [thread:$0]  (!%p1200_p11), %s1196_s26, 128, %s1198_s17, %s284_s16  }
  0x5e   : > { %303 = sbr.rel (%p1103_p8) target bundleno = 1421 (0x58d), region = 52  ;;  %s1232_s21 = sand.u32 (!%p1103_p8), 1, %s1000_s28  }
  0x5f   : > { %s715_s10 = sshll.u32 (!%p1103_p8), %s1232_s21, 3  ;;  %s306_s15 = scalar_lea.sflag (!%p1103_p8), [#allocation3], %s1232_s21 }
  0x60   : > { %s309_s24 = scalar_lea.vmem (!%p1103_p8), [#allocation2], %s715_s10  ;;  %p1341_p4 = scmp.ne.s32.totalorder (!%p1103_p8), %s1334_s11, 0 }
  0x65   : > { %983 = dma.done.wait (%p1341_p4), %s306_s15, 128  }
  0x66   : > { %985 = vsyncadd (%p1341_p4), %s306_s15, 4294967168  ;;  %p1342_p5 = scmp.eq.s32.totalorder %s1084_s9, 0 }
  0x68   : > { %987 = dma.done.wait (%p1342_p5), [#allocation6], 512   ;;  %p1343_p8 = pmov %p1342_p5 }
  0x69   : > { %v1015_v0 = vmov 0.0   ;;  %vm1016_vm0 = vmmov 0   ;;  %v840_v1 = vld [vmem:[#allocation5] sm:$0xff]   ;;  %v841_v2 = vld [vmem:[#allocation5 + $0x8] sm:$0xff]   ;;  %v359_v3 = vld [vmem:[%s309_s24] sm:$0xff]  ;;  %vm377_vm1 = vcmask 261120  }
  0x6a   : > { %989 = vsyncadd (%p1343_p8), [#allocation6], 4294966784  ;;  %745 = vmatprep.subr.bf16.mxu0 %v1015_v0  ;;  %749 = vmatprep.mubr.msk.bf16.mxu0 %vm1016_vm0, %v1015_v0  ;;  %v360_v4 = vpack.c.bf16 %v359_v3, %v359_v3  ;;  %v842_v15 = vld [vmem:[#allocation7] sm:$0xff]   ;;  %v843_v16 = vld [vmem:[#allocation7 + $0x8] sm:$0xff]   ;;  %s733_s13 = sshll.u32 %s1084_s9, 7  ;;  %s349_s26 = scalar_lea.vmem [#allocation8], %s715_s10 }
  0x6b   : > { %753 = vmatprep.subr.bf16.mxu1 %v1015_v0  ;;  %757 = vmatprep.mubr.msk.bf16.mxu1 %vm1016_vm0, %v1015_v0  ;;  %v844_v23 = vld [vmem:[%s1328_s6] sm:$0xff]   ;;  %v845_v24 = vld [vmem:[%s1328_s6 + $0x8] sm:$0xff]   ;;  %s618_s17 = sshll.u32 %s349_s26, 4  ;;  %s1277_s18 = scalar_lea.hbm %s1330_s8, %s733_s13  ;;  %s1279_s17 = int_to_ptr.vmem [resolvable:$true] %s618_s17 }
  0x6c   : > { %746 = vmatpush3.bf16.msra.mxu0 %v840_v1  ;;  %754 = vmatpush3.bf16.msra.mxu1 %v842_v15  ;;  %v722_v25 = vld [vmem:[%s1327_s5] ss:$0 sm:$0xff]  ;;  %s605_s25 = scalar_lea.sflag [#allocation4], %s1232_s21  ;;  %s938_s14 = scalar_lea.vmem %s1279_s17, 128 }
  0x6d   : > { %747 = vmatprep.subr.bf16.mxu0 %v1015_v0  ;;  %755 = vmatprep.subr.bf16.mxu1 %v1015_v0  ;;  %v726_v41 = vld [vmem:[%s1329_s7] ss:$0 sm:$0xff]  ;;  %p939_p11 = scmp.ne.s32.totalorder %s1279_s17, %s938_s14  ;;  %p1344_p0 = scmp.ne.s32.totalorder %s1339_s22, 0 }
  0x6e   : > { %v730_v57 = vld [vmem:[%s1324_s2] ss:$0 sm:$0xff]  ;;  %s1017_s9 = smov [#allocation8]  }
  0x6f   : > { %v731_v59 = vld [vmem:[%s1325_s3] ss:$0 sm:$0xff]  ;;  %p940_p1 = pnand %p939_p11, %p1344_p0  ;;  %s942_s10 = sshll.u32 %s1017_s9, 4  ;;  %s943_s10 = int_to_ptr.vmem [resolvable:$false] %s942_s10 }
  0x70   : > { %748 = vmatpush3.bf16.msra.mxu0 %v841_v2  ;;  %756 = vmatpush3.bf16.msra.mxu1 %v843_v16  ;;  %s944_s15 = scalar_lea.vmem %s943_s10, 256  ;;  %p945_p7 = scmp.lt.s32.totalorder %s1279_s17, %s943_s10 }
  0x71   : > { %761 = vmatprep.subr.bf16.mxu0 %v1015_v0  ;;  %p941_p3 = pneg %p940_p1  ;;  %p946_p9 = scmp.lt.s32.totalorder %s944_s15, %s938_s14 }
  0x73   : > { %750 = vmatmul.mubr.msk.bf16.vlgmr.msra.gmra.mrb[0].mxu0 %vm377_vm1, %v360_v4  ;;  %p947_p12 = por %p946_p9, %p945_p7 }
  0x74   : > { %765 = vmatprep.mubr.msk.bf16.mxu0 %vm1016_vm0, %v1015_v0  ;;  %762 = vmatpush3.bf16.msra.mxu0 %v844_v23 }
  0x75   : > { %763 = vmatprep.subr.bf16.mxu0 %v1015_v0  ;;  %p948_p2 = pnand %p947_p12, %p941_p3 }
  0x78   : > { %764 = vmatpush3.bf16.msra.mxu0 %v845_v24 }
 0x146   : > { %v415_v5 = vpop.f32.mrb[0].mxu0 }
 0x147   : > { %v751_v6 = vpop.f32.mrb[1].mxu0  ;;  %v421_v7 = vsel %vm377_vm1, %v415_v5, 0.0 }
 0x148   : > { %422 = vadd.xlane.f32.xlu0 %v421_v7  ;;  %v418_v8 = vpop.f32.mrb[2].mxu0 }
 0x149   : > { %v752_v9 = vpop.f32.mrb[3].mxu0 }
 0x1d5   : > { %v423_v10 = vpop.xlane.xlu0 %422 }
 0x1d6   : > { %v425_v11 = vmul.f32 0.03125, %v423_v10 }
 0x1d8   : > { %v426_v12 = vsub.f32 %v415_v5, %v425_v11 }
 0x1da   : > { %v427_v13 = vmul.f32 %v426_v12, %v426_v12 }
 0x1dc   : > { %v428_v14 = vsel %vm377_vm1, %v427_v13, 0.0 }
 0x1dd   : > { %429 = vadd.xlane.f32.xlu0 %v428_v14 }
 0x26a   : > { %v430_v17 = vpop.xlane.xlu0 %429 }
 0x26b   : > { %v431_v18 = vmul.f32 0.03125, %v430_v17 }
 0x26d   : > { %v432_v19 = vadd.f32 1e-05, %v431_v18 }
 0x26f   : > { %846 = vrsqrt.f32 %v432_v19 }
 0x279   : > { %v847_v20 = vpop.eup %846 }
 0x27a   : > { %v434_v21 = vmul.f32 %v847_v20, %v426_v12 }
 0x27c   : > { %v435_v22 = vpack.c.bf16 %v434_v21, %v434_v21 }
 0x27e   : > { %758 = vmatmul.mubr.msk.bf16.vlgmr.msra.gmra.mrb[0].mxu1 %vm377_vm1, %v435_v22 }
 0x351   : > { %v495_v26 = vpop.f32.mrb[0].mxu1 }
 0x352   : > { %v496_v27 = vadd.f32 %v722_v25, %v495_v26  ;;  %v759_v28 = vpop.f32.mrb[1].mxu1 }
 0x353   : > { %v498_v29 = vpop.f32.mrb[2].mxu1 }
 0x354   : > { %v501_v30 = vpack.c.bf16 %v496_v27, %v496_v27  ;;  %v760_v31 = vpop.f32.mrb[3].mxu1 }
 0x356   : > { %v503_v32 = vmul.bf16 %v501_v30, %v501_v30  ;;  %v502_v38 = vmul.bf16 1056980736, %v501_v30 }
 0x358   : > { %v504_v33 = vmul.bf16 %v503_v32, %v501_v30 }
 0x35a   : > { %v505_v34 = vmul.bf16 1027030327, %v504_v33 }
 0x35c   : > { %v506_v35 = vadd.bf16 %v505_v34, %v501_v30 }
 0x35e   : > { %v507_v36 = vmul.bf16 1061961548, %v506_v35 }
 0x360   : > { %848 = vtanh.bf16 %v507_v36 }
 0x36b   : > { %v849_v37 = vpop.eup %848 }
 0x36c   : > { %v509_v39 = vadd.bf16 1065369472, %v849_v37 }
 0x36e   : > { %v510_v40 = vmul.bf16 %v509_v39, %v502_v38 }
 0x370   : > { %766 = vmatmul.mubr.msk.bf16.vlgmr.msra.gmra.mrb[4].mxu0 %vm377_vm1, %v510_v40 }
 0x443   : > { %v570_v42 = vpop.f32.mrb[4].mxu0 }
 0x444   : > { %v571_v43 = vadd.f32 %v726_v41, %v570_v42  ;;  %v767_v44 = vpop.f32.mrb[5].mxu0 }
 0x445   : > { %v573_v45 = vpop.f32.mrb[6].mxu0 }
 0x446   : > { %v768_v46 = vpop.f32.mrb[7].mxu0  ;;  %v576_v47 = vsel %vm377_vm1, %v571_v43, 0.0 }
 0x447   : > { %577 = vadd.xlane.f32.xlu1 %v576_v47 }
 0x4d4   : > { %v578_v48 = vpop.xlane.xlu1 %577 }
 0x4d5   : > { %v579_v49 = vmul.f32 0.03125, %v578_v48 }
 0x4d7   : > { %v580_v50 = vsub.f32 %v571_v43, %v579_v49 }
 0x4d9   : > { %v581_v51 = vmul.f32 %v580_v50, %v580_v50 }
 0x4db   : > { %v582_v52 = vsel %vm377_vm1, %v581_v51, 0.0 }
 0x4dc   : > { %583 = vadd.xlane.f32.xlu1 %v582_v52 }
 0x569   : > { %v584_v53 = vpop.xlane.xlu1 %583 }
 0x56a   : > { %v585_v54 = vmul.f32 0.03125, %v584_v53 }
 0x56c   : > { %v586_v55 = vadd.f32 1e-05, %v585_v54 }
 0x56e   : > { %850 = vrsqrt.f32 %v586_v55 }
 0x578   : > { %v851_v56 = vpop.eup %850 }
 0x579   : > { %v588_v58 = vmul.f32 %v851_v56, %v580_v50 }
 0x57b   : > { %v595_v60 = vmul.f32 %v730_v57, %v588_v58 }
 0x57d   : > { %v602_v61 = vadd.f32 %v731_v59, %v595_v60 }
 0x57f   : > { %603 = vst.msk [vmem:[%s349_s26] sm:$0xff] %vm377_vm1, %v602_v61 }
 0x580   : > { %951 = shalt.err (!%p948_p2)
}
 0x581   : > { %s952_s21 = scalar_lea.hbm %s1277_s18, 128  ;;  %s956_s13 = scalar_lea.hbm %s1330_s8, 256 }
 0x582   : > { %p953_p13 = scmp.ne.s32.totalorder %s1277_s18, %s952_s21  ;;  %p957_p4 = scmp.lt.u32.totalorder %s1277_s18, %s1330_s8 }
 0x583   : > { %p958_p5 = scmp.lt.u32.totalorder %s956_s13, %s952_s21  ;;  %p960_p11 = scmp.lt.u32.totalorder %s952_s21, %s1277_s18 }
 0x584   : > { %p954_p6 = pnand %p953_p13, %p1344_p0 }
 0x585   : > { %p959_p8 = por %p958_p5, %p957_p4 }
 0x586   : > { %p955_p10 = pneg %p954_p6 }
 0x587   : > { %p961_p1 = por %p960_p11, %p959_p8 }
 0x589   : > { %p962_p3 = pnand %p961_p1, %p955_p10 }
 0x58b   : > { %965 = shalt.err (!%p962_p3)
}
 0x58c   : > { %779 = dma.vmem_to_hbm [thread:$0]  (%p1344_p0), %s1279_s17, 128, %s1277_s18, %s605_s25  }
 0x58d PF: > { %s630_s16 = sand.u32 1, %s996_s27   ;;  %p1345_p7 = scmp.ne.s32.totalorder %s1335_s12, 0 }
 0x58e   : > { %p1346_p9 = scmp.ge.s32.totalorder %s1008_s30, 2  ;;  %s631_s14 = scalar_lea.sflag [#allocation4], %s630_s16 }
 0x590   : > { %p793_p12 = pnand %p1346_p9, %p1345_p7 }
 0x592   : > { %991 = dma.done.wait (!%p793_p12), %s631_s14, 128  }
 0x593   : > { %993 = vsyncadd (!%p793_p12), %s631_s14, 4294967168  ;;  %p22_p2 = scmp.ge.s32.totalorder %s1173_s20, 4   ;;  %s1347_s27 = smov %s1000_s28 }
 0x594   : > { %s1348_s28 = smov %s1004_s29  ;;  %s1349_s29 = smov %s1189_s23 }
 0x595   : > { %s1350_s30 = smov %s1173_s20  ;;  %24 = sbr.rel (!%p22_p2) target bundleno = 6 (0x6), region = 105 }
 0x59c   :  { %636 = vsyncpa [#allocation3], 1 }
 0x59d   :  { %638 = vsyncpa [#allocation3 + $0x1], 1 }
 0x59e   :  { %639 = vsyncpa [#allocation6], 1 }
 0x59f   :  { %640 = vsyncpa [#allocation4], 1 }
 0x5a0   :  { %642 = vsyncpa [#allocation4 + $0x1], 1 }

</bundles_post_ra>
